<compile_context>
chip_gen: v7x
topology: tpu7x:2x2x1
jax: 0.10.0
libtpu: 0.0.40
codegen_flags: <defaults>
</compile_context>

<pallas_src>
import functools
import math

import jax
import jax.numpy as jnp
from jax.experimental import pallas as pl
from jax.experimental.pallas import tpu as pltpu


_VMEM_BUDGET_CAP = 48 << 20   # conservative: v7x has only 64 MiB VMEM per TC.


def _head_kernel(x_ref, w1_ref, gamma_ref, beta_ref, w2_ref, b2_ref, o_ref,
                 acc_ref, *, eps: float):
    # x:     (B, Din)           resident, single-buffered
    # w1:    (Din, tDh)         streamed hidden tile of W1 (in, out layout)
    # gamma: (n_tiles, 1, tDh)  resident BN weight, tile-major
    # beta:  (n_tiles, 1, tDh)  resident BN bias, tile-major
    # w2:    (tDh, Dout)        streamed hidden tile of W2 (in, out layout)
    # b2:    (1, Dout)          resident second-Linear bias
    # o:     (B, Dout)          this shard's output block (written at last step)
    # acc:   (B, Dout) f32      per-core VMEM scratch accumulator
    c = pl.program_id(0)                  # core-split shard ("parallel")
    k = pl.program_id(1)                  # hidden tile within shard ("arbitrary")
    nk = pl.num_programs(1)

    @pl.when(k == 0)
    def _():
        acc_ref[...] = jnp.zeros_like(acc_ref)

    # ---- Linear 1 (no bias): MXU in native dtype, f32 accumulation.
    h = jnp.dot(x_ref[...], w1_ref[...], preferred_element_type=jnp.float32)

    # ---- BatchNorm1d, training mode (full-batch biased stats), folded to one
    # per-feature scale/shift.  Stats are per-feature so Dh tiling is exact.
    mean = jnp.mean(h, axis=0, keepdims=True)                    # (1, tDh)
    var = jnp.mean(h * h, axis=0, keepdims=True) - mean * mean   # one-pass
    var = jnp.maximum(var, 0.0)          # guard one-pass cancellation -> NaN
    tile = c * nk + k                    # global hidden-tile index
    gamma = gamma_ref[tile].astype(jnp.float32)                  # (1, tDh)
    beta = beta_ref[tile].astype(jnp.float32)                    # (1, tDh)
    scale = gamma * jax.lax.rsqrt(var + eps)                     # EUP rsqrt
    shift = beta - mean * scale

    # ---- scale/shift + ReLU (single VPU pass over the hidden tile).
    h = jnp.maximum(h * scale + shift, 0.0)

    # ---- Linear 2 partial product, accumulated over hidden tiles.
    acc_ref[...] += jnp.dot(h.astype(w2_ref.dtype), w2_ref[...],
                            preferred_element_type=jnp.float32)

    @pl.when(k == nk - 1)
    def _():
        # Bias contributes exactly once overall: only shard 0 adds it.
        bias = jnp.where(c == 0, 1.0, 0.0) * b2_ref[...].astype(jnp.float32)
        o_ref[...] = (acc_ref[...] + bias).astype(o_ref.dtype)


def _vmem_bytes(B, Din, Dh, Dout, tDh, x_dtype, w_dtype, out_dtype,
                weight_buffers):
    it = lambda d: jnp.dtype(d).itemsize
    return (weight_buffers * Din * tDh * it(w_dtype)      # W1 stream
            + weight_buffers * tDh * Dout * it(w_dtype)   # W2 stream
            + B * Din * it(x_dtype)                       # x (resident, 1 buf)
            + 2 * Dh * 4                                  # gamma + beta
            + Dout * 4                                    # b2
            + B * Dout * it(out_dtype)                    # output block
            + B * Dout * 4)                               # f32 accumulator


def _pick_hidden_tile(Dh, block_dh, fits, min_steps=4):
    """Largest 128-multiple tile dividing Dh that fits the VMEM budget and
    keeps the weight stream pipelined (>= min_steps grid steps) if possible."""
    block_dh = max(128, min(block_dh, Dh))
    cands = [t for t in range(128, block_dh + 1, 128) if Dh % t == 0]
    fitting = [t for t in cands if fits(t)] or [cands[0]]
    pipelined = [t for t in fitting if Dh // t >= min_steps]
    return max(pipelined) if pipelined else max(fitting)


def byol_prediction_head(x, w1_t, gamma, beta, w2_t, b2, *,
                         eps: float = 1e-5, block_dh: int = 512,
                         weight_buffers: int = 2, core_splits: int = 1):
    """BYOL prediction head forward pass (BatchNorm in training mode).

    Args:
      x:     (B, Din)   activations (f32 or bf16; bf16 preferred -- the kernel
                        is weight-bandwidth-bound at realistic batch sizes).
      w1_t:  (Din, Dh)  first Linear weight, pre-transposed to (in, out).
      gamma: (Dh,)      BatchNorm1d weight.
      beta:  (Dh,)      BatchNorm1d bias.
      w2_t:  (Dh, Dout) second Linear weight, pre-transposed to (in, out).
      b2:    (Dout,)    second Linear bias.
      block_dh:        max hidden tile (auto-shrunk to fit VMEM / pipeline).
      weight_buffers:  pipeline depth for streamed W1/W2 tiles (use 3 on v5e).
      core_splits:     shards of the Dh reduction across TensorCores (2 on v7x).
    """
    B, Din = x.shape
    Dh = w1_t.shape[1]
    Dout = w2_t.shape[1]

    # Dtype-aware alignment: sub-32-bit dtypes pack along sublanes.
    sublane_pack = max(1, 4 // jnp.dtype(x.dtype).itemsize)
    assert B % (8 * sublane_pack) == 0, (
        f"batch must be a multiple of {8 * sublane_pack} for {x.dtype}")
    assert Din % 128 == 0 and Dout % 128 == 0, "Din/Dout must be multiples of 128"
    assert Dh % 128 == 0, "hidden dim must be a multiple of 128"

    out_dtype = x.dtype if core_splits == 1 else jnp.float32
    w_dtype = w1_t.dtype

    fits = lambda t: _vmem_bytes(B, Din, Dh, Dout, t, x.dtype, w_dtype,
                                 out_dtype, weight_buffers) <= _VMEM_BUDGET_CAP
    tDh = _pick_hidden_tile(Dh, block_dh, fits)
    n_k = Dh // tDh

    # Shard the Dh reduction across TensorCores (v7x megacore); fall back to a
    # divisor of n_k if the requested split does not divide the tile count.
    n_c = max(1, math.gcd(core_splits, n_k))
    nkpc = n_k // n_c

    gamma_t = gamma.reshape(n_k, 1, tDh)      # tile-major resident BN params
    beta_t = beta.reshape(n_k, 1, tDh)
    b2_2 = b2.reshape(1, Dout)

    vmem_need = _vmem_bytes(B, Din, Dh, Dout, tDh, x.dtype, w_dtype, out_dtype,
                            weight_buffers)
    vmem_limit = int(max(vmem_need + (2 << 20), 32 << 20))

    out_bytes = n_c * B * Dout * jnp.dtype(out_dtype).itemsize
    cost = pl.CostEstimate(
        flops=2 * B * Din * Dh + 2 * B * Dh * Dout + 8 * B * Dh,
        transcendentals=Dh,
        bytes_accessed=(x.nbytes + w1_t.nbytes + w2_t.nbytes + gamma.nbytes
                        + beta.nbytes + b2.nbytes + out_bytes),
    )

    grid_spec = pltpu.PrefetchScalarGridSpec(
        num_scalar_prefetch=0,
        grid=(n_c, nkpc),
        in_specs=[
            # x: resident across the whole grid -> single buffer.
            pl.BlockSpec((B, Din), lambda c, k: (0, 0),
                         pipeline_mode=pl.Buffered(1)),
            # W1 hidden tile: streamed along the reduction axis.
            pl.BlockSpec((Din, tDh), lambda c, k: (0, c * nkpc + k),
                         pipeline_mode=pl.Buffered(weight_buffers)),
            # gamma / beta: one resident block each, sliced in-kernel.
            pl.BlockSpec((n_k, 1, tDh), lambda c, k: (0, 0, 0),
                         pipeline_mode=pl.Buffered(1)),
            pl.BlockSpec((n_k, 1, tDh), lambda c, k: (0, 0, 0),
                         pipeline_mode=pl.Buffered(1)),
            # W2 hidden tile: streamed along the reduction axis.
            pl.BlockSpec((tDh, Dout), lambda c, k: (c * nkpc + k, 0),
                         pipeline_mode=pl.Buffered(weight_buffers)),
            # b2: resident.
            pl.BlockSpec((1, Dout), lambda c, k: (0, 0),
                         pipeline_mode=pl.Buffered(1)),
        ],
        out_specs=pl.BlockSpec((B, Dout), lambda c, k: (c, 0),
                               pipeline_mode=pl.Buffered(1)),
        scratch_shapes=[pltpu.VMEM((B, Dout), jnp.float32)],
    )

    partials = pl.pallas_call(
        functools.partial(_head_kernel, eps=eps),
        out_shape=jax.ShapeDtypeStruct((n_c * B, Dout), out_dtype),
        grid_spec=grid_spec,
        compiler_params=pltpu.CompilerParams(
            dimension_semantics=("parallel", "arbitrary"),
            vmem_limit_bytes=vmem_limit),
        cost_estimate=cost,
    )(x, w1_t, gamma_t, beta_t, w2_t, b2_2)

    if n_c == 1:
        return partials
    # One tiny f32 combine of the per-core partial sums.
    return partials.reshape(n_c, B, Dout).sum(axis=0).astype(x.dtype)


def _reference(x, w1, gamma, beta, w2, b2, eps=1e-5):
    # PyTorch-layout math: Linear(no bias) -> BatchNorm1d(train) -> ReLU -> Linear.
    x = x.astype(jnp.float32)
    h = x @ w1.astype(jnp.float32).T
    mean = jnp.mean(h, axis=0, keepdims=True)
    var = jnp.mean((h - mean) ** 2, axis=0, keepdims=True)   # biased (training)
    h = (h - mean) / jnp.sqrt(var + eps)
    h = h * gamma + beta
    h = jnp.maximum(h, 0.0)
    return h @ w2.astype(jnp.float32).T + b2


if __name__ == "__main__":
    # Module-default shapes: input_dim=256, hidden_dim=1024, output_dim=256.
    # Note: B=16 under-fills the MXU rows; at this size the kernel is
    # DMA/weight-stream bound, which is exactly what the tiling optimizes.
    B, Din, Dh, Dout = 16, 256, 1024, 256

    key = jax.random.PRNGKey(0)
    k1, k2, k3, k4, k5, k6 = jax.random.split(key, 6)

    x = jax.random.normal(k1, (B, Din), dtype=jnp.float32)

    # Synthetic parameters in PyTorch layout.
    w1 = jax.random.normal(k2, (Dh, Din), dtype=jnp.float32) / jnp.sqrt(Din)
    gamma = 1.0 + 0.1 * jax.random.normal(k3, (Dh,), dtype=jnp.float32)
    beta = 0.1 * jax.random.normal(k4, (Dh,), dtype=jnp.float32)
    w2 = jax.random.normal(k5, (Dout, Dh), dtype=jnp.float32) / jnp.sqrt(Dh)
    b2 = 0.01 * jax.random.normal(k6, (Dout,), dtype=jnp.float32)

    # One-time layout conversion at parameter-init time (not on the forward path).
    w1_t = jnp.transpose(w1)   # (Din, Dh)
    w2_t = jnp.transpose(w2)   # (Dh, Dout)

    ref = _reference(x, w1, gamma, beta, w2, b2)

    # 1) f32, single-shard schedule.
    fwd = jax.jit(byol_prediction_head)
    out = jax.block_until_ready(fwd(x, w1_t, gamma, beta, w2_t, b2))
    assert out.shape == (B, Dout) and out.dtype == x.dtype
    err = float(jnp.max(jnp.abs(out - ref)))
    assert err < 1e-3, f"f32 mismatch vs reference: max abs err = {err}"

    # 2) Dh reduction split in two shards (v7x megacore path; runs serially but
    #    bit-equivalently-close on 1-TC chips).
    fwd2 = jax.jit(functools.partial(byol_prediction_head, core_splits=2))
    out2 = jax.block_until_ready(fwd2(x, w1_t, gamma, beta, w2_t, b2))
    err2 = float(jnp.max(jnp.abs(out2 - ref)))
    assert err2 < 1e-3, f"core-split mismatch vs reference: max abs err = {err2}"

    # 3) bf16 streamed operands (bandwidth-optimal config); f32 accumulation
    #    and BN fold stay inside the kernel.
    xb = x.astype(jnp.bfloat16)
    w1b_t = w1_t.astype(jnp.bfloat16)
    w2b_t = w2_t.astype(jnp.bfloat16)
    refb = _reference(xb, w1b_t.T, gamma, beta, w2b_t.T, b2)
    outb = jax.block_until_ready(fwd(xb, w1b_t, gamma, beta, w2b_t, b2))
    assert outb.dtype == jnp.bfloat16
    errb = float(jnp.max(jnp.abs(outb.astype(jnp.float32) - refb)))
    assert errb < 1e-1, f"bf16 mismatch vs reference: max abs err = {errb}"

    print("KERNEL_OK")
</pallas_src>

<mosaic_0001>
module attributes {stable_mosaic.version = 11 : i64} {
  func.func @_head_kernel(%arg0: i32, %arg1: i32, %arg2: memref<16x256xf32, #tpu.memory_space<vmem>>, %arg3: memref<256x256xf32, #tpu.memory_space<vmem>>, %arg4: memref<4x1x256xf32, #tpu.memory_space<vmem>>, %arg5: memref<4x1x256xf32, #tpu.memory_space<vmem>>, %arg6: memref<256x256xf32, #tpu.memory_space<vmem>>, %arg7: memref<1x256xf32, #tpu.memory_space<vmem>>, %arg8: memref<16x256xf32, #tpu.memory_space<vmem>>, %arg9: memref<16x256xf32, #tpu.memory_space<vmem>>) attributes {dimension_semantics = [#tpu.dimension_semantics<parallel>, #tpu.dimension_semantics<arbitrary>], iteration_bounds = array<i64: 1, 4>, scalar_prefetch = 0 : i64, scratch_operands = 1 : i64, tpu.core_type = #tpu.core_type<tc>, window_params = [{pipeline_mode = #tpu.pipeline_mode<synchronous>, transform_indices = @transform_0, window_bounds = array<i64: 16, 256>}, {pipeline_mode = #tpu.pipeline_mode<double_buffered>, transform_indices = @transform_1, window_bounds = array<i64: 256, 256>}, {pipeline_mode = #tpu.pipeline_mode<synchronous>, transform_indices = @transform_2, window_bounds = array<i64: 4, 1, 256>}, {pipeline_mode = #tpu.pipeline_mode<synchronous>, transform_indices = @transform_3, window_bounds = array<i64: 4, 1, 256>}, {pipeline_mode = #tpu.pipeline_mode<double_buffered>, transform_indices = @transform_4, window_bounds = array<i64: 256, 256>}, {pipeline_mode = #tpu.pipeline_mode<synchronous>, transform_indices = @transform_5, window_bounds = array<i64: 1, 256>}, {pipeline_mode = #tpu.pipeline_mode<synchronous>, transform_indices = @transform_6, window_bounds = array<i64: 16, 256>}]} {
    %c0_i32 = arith.constant 0 : i32
    %0 = arith.cmpi eq, %arg1, %c0_i32 : i32
    %1 = arith.extui %0 : i1 to i32
    %c0_i32_0 = arith.constant 0 : i32
    %2 = arith.cmpi ne, %1, %c0_i32_0 : i32
    scf.if %2 {
      %cst_23 = arith.constant 0.000000e+00 : f32
      %47 = vector.broadcast %cst_23 : f32 to vector<16x256xf32>
      %c0_24 = arith.constant 0 : index
      %c0_25 = arith.constant 0 : index
      %48 = vector.load %arg9[%c0_24, %c0_25] : memref<16x256xf32, #tpu.memory_space<vmem>>, vector<16x256xf32>
      tpu.vector_store %arg9[%c0_24, %c0_25], %47 {strides = array<i32>} : memref<16x256xf32, #tpu.memory_space<vmem>>, vector<16x256xf32>,
    } else {
    }
    %c0 = arith.constant 0 : index
    %c0_1 = arith.constant 0 : index
    %3 = vector.load %arg2[%c0, %c0_1] : memref<16x256xf32, #tpu.memory_space<vmem>>, vector<16x256xf32>
    %c0_2 = arith.constant 0 : index
    %c0_3 = arith.constant 0 : index
    %4 = vector.load %arg3[%c0_2, %c0_3] : memref<256x256xf32, #tpu.memory_space<vmem>>, vector<256x256xf32>
    %cst = arith.constant dense<0.000000e+00> : vector<16x256xf32>
    %5 = tpu.matmul %3, %4, %cst {dimension_numbers = #tpu.dot_dimension_numbers<[1], [0], [0], [1], [0, 0, 1, 1], [], []>} : vector<16x256xf32>, vector<256x256xf32>, vector<16x256xf32> -> vector<16x256xf32>
    %cst_4 = arith.constant dense<0.000000e+00> : vector<256xf32>
    %6 = vector.multi_reduction <add>, %5, %cst_4 [0] : vector<16x256xf32> to vector<256xf32>
    %7 = vector.shape_cast %6 : vector<256xf32> to vector<1x256xf32>
    %cst_5 = arith.constant 1.600000e+01 : f32
    %8 = vector.broadcast %cst_5 : f32 to vector<1x256xf32>
    %9 = arith.divf %7, %8 : vector<1x256xf32>
    %10 = arith.mulf %5, %5 : vector<16x256xf32>
    %cst_6 = arith.constant dense<0.000000e+00> : vector<256xf32>
    %11 = vector.multi_reduction <add>, %10, %cst_6 [0] : vector<16x256xf32> to vector<256xf32>
    %12 = vector.shape_cast %11 : vector<256xf32> to vector<1x256xf32>
    %cst_7 = arith.constant 1.600000e+01 : f32
    %13 = vector.broadcast %cst_7 : f32 to vector<1x256xf32>
    %14 = arith.divf %12, %13 : vector<1x256xf32>
    %15 = arith.mulf %9, %9 : vector<1x256xf32>
    %16 = arith.subf %14, %15 : vector<1x256xf32>
    %cst_8 = arith.constant 0.000000e+00 : f32
    %17 = vector.broadcast %cst_8 : f32 to vector<1x256xf32>
    %18 = arith.maximumf %16, %17 : vector<1x256xf32>
    %c4_i32 = arith.constant 4 : i32
    %19 = arith.muli %arg0, %c4_i32 : i32
    %20 = arith.addi %19, %arg1 : i32
    %21 = arith.index_cast %20 : i32 to index
    %c0_9 = arith.constant 0 : index
    %c0_10 = arith.constant 0 : index
    %22 = vector.load %arg4[%21, %c0_9, %c0_10] : memref<4x1x256xf32, #tpu.memory_space<vmem>>, vector<1x1x256xf32>
    %23 = vector.shape_cast %22 : vector<1x1x256xf32> to vector<1x256xf32>
    %24 = arith.index_cast %20 : i32 to index
    %c0_11 = arith.constant 0 : index
    %c0_12 = arith.constant 0 : index
    %25 = vector.load %arg5[%24, %c0_11, %c0_12] : memref<4x1x256xf32, #tpu.memory_space<vmem>>, vector<1x1x256xf32>
    %26 = vector.shape_cast %25 : vector<1x1x256xf32> to vector<1x256xf32>
    %cst_13 = arith.constant 9.99999974E-6 : f32
    %27 = vector.broadcast %cst_13 : f32 to vector<1x256xf32>
    %28 = arith.addf %18, %27 : vector<1x256xf32>
    %29 = math.rsqrt %28 : vector<1x256xf32>
    %30 = arith.mulf %23, %29 : vector<1x256xf32>
    %31 = arith.mulf %9, %30 : vector<1x256xf32>
    %32 = arith.subf %26, %31 : vector<1x256xf32>
    %33 = vector.broadcast %30 : vector<1x256xf32> to vector<16x256xf32>
    %34 = arith.mulf %5, %33 : vector<16x256xf32>
    %35 = vector.broadcast %32 : vector<1x256xf32> to vector<16x256xf32>
    %36 = arith.addf %34, %35 : vector<16x256xf32>
    %cst_14 = arith.constant 0.000000e+00 : f32
    %37 = vector.broadcast %cst_14 : f32 to vector<16x256xf32>
    %38 = arith.maximumf %36, %37 : vector<16x256xf32>
    %c0_15 = arith.constant 0 : index
    %c0_16 = arith.constant 0 : index
    %39 = vector.load %arg9[%c0_15, %c0_16] : memref<16x256xf32, #tpu.memory_space<vmem>>, vector<16x256xf32>
    %c0_17 = arith.constant 0 : index
    %c0_18 = arith.constant 0 : index
    %40 = vector.load %arg6[%c0_17, %c0_18] : memref<256x256xf32, #tpu.memory_space<vmem>>, vector<256x256xf32>
    %cst_19 = arith.constant dense<0.000000e+00> : vector<16x256xf32>
    %41 = tpu.matmul %38, %40, %cst_19 {dimension_numbers = #tpu.dot_dimension_numbers<[1], [0], [0], [1], [0, 0, 1, 1], [], []>} : vector<16x256xf32>, vector<256x256xf32>, vector<16x256xf32> -> vector<16x256xf32>
    %42 = arith.addf %39, %41 : vector<16x256xf32>
    %c0_20 = arith.constant 0 : index
    %c0_21 = arith.constant 0 : index
    %43 = vector.load %arg9[%c0_20, %c0_21] : memref<16x256xf32, #tpu.memory_space<vmem>>, vector<16x256xf32>
    tpu.vector_store %arg9[%c0_20, %c0_21], %42 {strides = array<i32>} : memref<16x256xf32, #tpu.memory_space<vmem>>, vector<16x256xf32>,
    %c3_i32 = arith.constant 3 : i32
    %44 = arith.cmpi eq, %arg1, %c3_i32 : i32
    %45 = arith.extui %44 : i1 to i32
    %c0_i32_22 = arith.constant 0 : i32
    %46 = arith.cmpi ne, %45, %c0_i32_22 : i32
    scf.if %46 {
      %c0_i32_23 = arith.constant 0 : i32
      %47 = arith.cmpi eq, %arg0, %c0_i32_23 : i32
      %cst_24 = arith.constant 1.000000e+00 : f32
      %cst_25 = arith.constant 0.000000e+00 : f32
      %48 = arith.select %47, %cst_24, %cst_25 : f32
      %c0_26 = arith.constant 0 : index
      %c0_27 = arith.constant 0 : index
      %49 = vector.load %arg7[%c0_26, %c0_27] : memref<1x256xf32, #tpu.memory_space<vmem>>, vector<1x256xf32>
      %50 = vector.broadcast %48 : f32 to vector<1x256xf32>
      %51 = arith.mulf %50, %49 : vector<1x256xf32>
      %c0_28 = arith.constant 0 : index
      %c0_29 = arith.constant 0 : index
      %52 = vector.load %arg9[%c0_28, %c0_29] : memref<16x256xf32, #tpu.memory_space<vmem>>, vector<16x256xf32>
      %53 = vector.broadcast %51 : vector<1x256xf32> to vector<16x256xf32>
      %54 = arith.addf %52, %53 : vector<16x256xf32>
      %c0_30 = arith.constant 0 : index
      %c0_31 = arith.constant 0 : index
      %55 = vector.load %arg8[%c0_30, %c0_31] : memref<16x256xf32, #tpu.memory_space<vmem>>, vector<16x256xf32>
      tpu.vector_store %arg8[%c0_30, %c0_31], %54 {strides = array<i32>} : memref<16x256xf32, #tpu.memory_space<vmem>>, vector<16x256xf32>,
    } else {
    }
    return
  }
  func.func @transform_0(%arg0: i32, %arg1: i32) -> (i32, i32) {
    %c0_i32 = arith.constant 0 : i32
    %c0_i32_0 = arith.constant 0 : i32
    %c0_i32_1 = arith.constant 0 : i32
    return %c0_i32, %c0_i32_0 : i32, i32
  }
  func.func @transform_1(%arg0: i32, %arg1: i32) -> (i32, i32) {
    %c4_i32 = arith.constant 4 : i32
    %0 = arith.muli %arg0, %c4_i32 : i32
    %1 = arith.addi %0, %arg1 : i32
    %c0_i32 = arith.constant 0 : i32
    %c0_i32_0 = arith.constant 0 : i32
    return %c0_i32, %1 : i32, i32
  }
  func.func @transform_2(%arg0: i32, %arg1: i32) -> (i32, i32, i32) {
    %c0_i32 = arith.constant 0 : i32
    %c0_i32_0 = arith.constant 0 : i32
    %c0_i32_1 = arith.constant 0 : i32
    %c0_i32_2 = arith.constant 0 : i32
    return %c0_i32, %c0_i32_0, %c0_i32_1 : i32, i32, i32
  }
  func.func @transform_3(%arg0: i32, %arg1: i32) -> (i32, i32, i32) {
    %c0_i32 = arith.constant 0 : i32
    %c0_i32_0 = arith.constant 0 : i32
    %c0_i32_1 = arith.constant 0 : i32
    %c0_i32_2 = arith.constant 0 : i32
    return %c0_i32, %c0_i32_0, %c0_i32_1 : i32, i32, i32
  }
  func.func @transform_4(%arg0: i32, %arg1: i32) -> (i32, i32) {
    %c4_i32 = arith.constant 4 : i32
    %0 = arith.muli %arg0, %c4_i32 : i32
    %1 = arith.addi %0, %arg1 : i32
    %c0_i32 = arith.constant 0 : i32
    %c0_i32_0 = arith.constant 0 : i32
    return %1, %c0_i32 : i32, i32
  }
  func.func @transform_5(%arg0: i32, %arg1: i32) -> (i32, i32) {
    %c0_i32 = arith.constant 0 : i32
    %c0_i32_0 = arith.constant 0 : i32
    %c0_i32_1 = arith.constant 0 : i32
    return %c0_i32, %c0_i32_0 : i32, i32
  }
  func.func @transform_6(%arg0: i32, %arg1: i32) -> (i32, i32) {
    %c0_i32 = arith.constant 0 : i32
    %c0_i32_0 = arith.constant 0 : i32
    return %arg0, %c0_i32 : i32, i32
  }
}

</mosaic_0001>

<bundles_post_ra>
// kernel: byol_prediction_head.1
= control target key start
LH: loop header
LB: loop body
LE: loop exit
PB: predicated region body
PF: predicated region fallthrough
CT: control target
= control target key end

     0   :  { %s1798_s0 = inlined_call_operand.hbm [shape: f32[16,256], index: 0, kind: input, shape index: {}]   ;;  %s1799_s1 = inlined_call_operand.hbm [shape: f32[256,1024], index: 1, kind: input, shape index: {}]   ;;  %s1800_s2 = inlined_call_operand.vmem [shape: f32[4,1,256], index: 2, kind: input, shape index: {}]   ;;  %s1801_s3 = inlined_call_operand.vmem [shape: f32[4,1,256], index: 3, kind: input, shape index: {}]   ;;  %s1802_s4 = inlined_call_operand.hbm [shape: f32[1024,256], index: 4, kind: input, shape index: {}]   ;;  %s1803_s5 = inlined_call_operand.vmem [shape: f32[1,256], index: 5, kind: input, shape index: {}]   ;;  %s1804_s6 = inlined_call_operand.hbm [shape: f32[16,256], index: 6, kind: output, shape index: {}]  }
   0x1   :  { %1810 = sst [smem:[#allocation13_spill]] %s1799_s1 }
   0x2   :  { %11 = vsyncpa [#allocation4], 0 }
   0x3   :  { %12 = vsyncpa [#allocation7], 0 }
   0x4   :  { %14 = vsyncpa [#allocation7 + $0x1], 0 }
   0x5   :  { %15 = vsyncpa [#allocation5], 0  ;;  %s1393_s21 = smov 0   ;;  %s1395_s22 = smov 0  }
   0x6   :  { %s1397_s23 = smov 0   ;;  %s1399_s24 = smov 0  }
   0x7   :  { %s1401_s25 = smov 0   ;;  %s1403_s26 = smov 0  }
   0x8 LB: > { %s30_s27 = sadd.s32 1, %s1341_s25  ;;  %s65_s28 = sadd.s32 1, %s1333_s23  ;;  %s1345_s26 = sphi %s1403_s26, %s21_s26   ;;  %s1341_s25 = sphi %s1401_s25, %s1826_s25   ;;  %s1337_s24 = sphi %s1399_s24, %s1825_s24   ;;  %s1333_s23 = sphi %s1397_s23, %s1824_s23   ;;  %s1329_s22 = sphi %s1395_s22, %s1823_s22   ;;  %s1325_s21 = sphi %s1393_s21, %s1822_s21  }
   0x9   : > { %p31_p0 = scmp.ge.s32.totalorder %s30_s27, 4  ;;  %p72_p1 = scmp.ne.s32.totalorder %s1333_s23, %s1329_s22 }
   0xa   : > { %p73_p2 = scmp.eq.s32.totalorder %s1345_s26, 0  ;;  %p1108_p5 = scmp.lt.s32.totalorder %s1345_s26, 4 }
   0xb   : > { %s1828_s27 = smov (%p31_p0, %s30_s27), 0  ;;  %s243_s7 = sand.u32 1, %s1345_s26  }
   0xc   : > { %p1430_p3 = por %p73_p2, %p72_p1  ;;  %s62_s30 = ssub.s32 %s1341_s25, %s1828_s27 }
   0xd   : > { %p63_p4 = scmp.eq.s32.totalorder %s62_s30, 0  ;;  %s245_s8 = sand.u32 1, %s1333_s23  }
   0xe   : > { %s1442_s10 = sshll.u32 %s245_s8, 9  ;;  %s953_s11 = sshll.u32 %s1341_s25, 8 }
   0xf   : > { %s1440_s9 = scalar_select %p63_p4, %s1333_s23, %s65_s28  }
  0x10   : > { %s1812_s1 = sld [smem:[#allocation13_spill]]  ;;  %s247_s15 = scalar_lea.vmem [#allocation6], %s1442_s10 }
  0x11   : > { %s256_s16 = sshll.u32 %s247_s15, 4  ;;  %p1455_p6 = pnand %p1108_p5, %p1430_p3  ;;  %s1451_s16 = int_to_ptr.vmem [resolvable:$true] %s256_s16 }
  0x12   : > { %s1459_s18 = scalar_lea.sflag [#allocation7], %s243_s7 }
  0x13   : > { %p1175_p8 = pneg %p1455_p6 }
  0x16   : > { %s1448_s14 = scalar_lea.hbm %s1812_s1, %s953_s11  ;;  %s1178_s29 = scalar_lea.hbm %s1812_s1, 32768 }
  0x17   : > { %s1173_s19 = scalar_lea.hbm %s1448_s14, 8192  ;;  %p1179_p11 = scmp.lt.u32.totalorder %s1448_s14, %s1812_s1 }
  0x18   : > { %p1174_p7 = scmp.ne.s32.totalorder %s1448_s14, %s1173_s19  ;;  %p1180_p12 = scmp.lt.u32.totalorder %s1178_s29, %s1173_s19 }
  0x19   : > { %p1182_p0 = scmp.lt.u32.totalorder %s1173_s19, %s1448_s14 }
  0x1a   : > { %p1176_p9 = pnand %p1175_p8, %p1174_p7  ;;  %p1181_p13 = por %p1180_p12, %p1179_p11 }
  0x1c   : > { %p1177_p10 = pneg %p1176_p9  ;;  %p1183_p1 = por %p1182_p0, %p1181_p13 }
  0x1e   : > { %p1184_p2 = pnand %p1183_p1, %p1177_p10 }
  0x20   : > { %1187 = shalt.err (!%p1184_p2)
}
  0x21   : > { %s1188_s7 = scalar_lea.vmem %s1451_s16, 8192  ;;  %s1347_s11 = smov [#allocation6]  }
  0x22   : > { %p1189_p3 = scmp.ne.s32.totalorder %s1451_s16, %s1188_s7  ;;  %s1193_s12 = sshll.u32 %s1347_s11, 4  ;;  %s1194_s12 = int_to_ptr.vmem [resolvable:$false] %s1193_s12 }
  0x23   : > { %s1195_s13 = scalar_lea.vmem %s1194_s12, 16384  ;;  %p1196_p7 = scmp.lt.s32.totalorder %s1451_s16, %s1194_s12 }
  0x24   : > { %p1191_p4 = pnand %p1189_p3, %p1175_p8  ;;  %p1197_p9 = scmp.lt.s32.totalorder %s1195_s13, %s1188_s7 }
  0x26   : > { %p1192_p5 = pneg %p1191_p4  ;;  %p1198_p11 = por %p1197_p9, %p1196_p7 }
  0x28   : > { %p1199_p12 = pnand %p1198_p11, %p1192_p5 }
  0x2a   : > { %1202 = shalt.err (!%p1199_p12)
}
  0x2b   : > { %s1348_s15 = smov 1024   ;;  %s1805_s19 = smov 256  }
  0x2c   : > { %s1350_s20 = smov 16   ;;  %s1490_s28 = sadd.s32 4294967295, %s1345_s26  }
  0x2d   : > { %1103 = dma.hbm_to_vmem [thread:$0]  (!%p1455_p6), %s1448_s14, 8192, %s1451_s16, %s1459_s18, %s1348_s15, %s1805_s19, %s1350_s20  }
  0x2e   : > { %p78_p10 = scmp.ne.s32.totalorder %s1329_s22, %s1325_s21  ;;  %p1807_p13 = scmp.eq.s32.totalorder %s1490_s28, 0 }
  0x2f   : > { %p932_p0 = scmp.ge.s32.totalorder %s1345_s26, 1  ;;  %p208_p1 = scmp.lt.s32.totalorder %s1345_s26, 5 }
  0x30   : > { %p1499_p2 = por %p1807_p13, %p78_p10  ;;  %s1351_s14 = smov [#allocation3]  }
  0x31   : > { %p1503_p3 = pnand %p932_p0, %p208_p1  ;;  %s220_s16 = sshll.u32 %s1351_s14, 4  ;;  %s1507_s16 = int_to_ptr.vmem [resolvable:$true] %s220_s16 }
  0x32   : > { %s1814_s29 = scalar_select %p1499_p2, 1, 0 }
  0x33   : > { %s1815_s30 = scalar_select %p1503_p3, 1, 0 }
  0x34   : > { %p1096_p4 = pneg %p1503_p3  ;;  %s955_s21 = sshll.u32 %s1341_s25, 13 }
  0x35   : > { %s1515_s11 = scalar_lea.hbm %s1802_s4, %s955_s21  ;;  %s270_s12 = scalar_lea.vmem [#allocation8], %s1442_s10 }
  0x36   : > { %s280_s13 = sshll.u32 %s270_s12, 4  ;;  %p1520_p5 = pnand %p1096_p4, %p1807_p13  ;;  %s1524_s13 = int_to_ptr.vmem [resolvable:$true] %s280_s13 }
  0x37   : > { %s1203_s14 = scalar_lea.hbm %s1515_s11, 8192  ;;  %s1208_s7 = scalar_lea.hbm %s1802_s4, 32768 }
  0x38   : > { %p1204_p7 = scmp.ne.s32.totalorder %s1515_s11, %s1203_s14  ;;  %p1209_p12 = scmp.lt.u32.totalorder %s1515_s11, %s1802_s4 }
  0x39   : > { %p1210_p10 = scmp.lt.u32.totalorder %s1208_s7, %s1203_s14  ;;  %p1212_p1 = scmp.lt.u32.totalorder %s1203_s14, %s1515_s11 }
  0x3a   : > { %p1206_p9 = pnand %p1204_p7, %p1175_p8 }
  0x3b   : > { %p1211_p0 = por %p1210_p10, %p1209_p12 }
  0x3c   : > { %p1207_p11 = pneg %p1206_p9 }
  0x3d   : > { %p1213_p4 = por %p1212_p1, %p1211_p0 }
  0x3f   : > { %p1214_p13 = pnand %p1213_p4, %p1207_p11 }
  0x41   : > { %1217 = shalt.err (!%p1214_p13)
}
  0x42   : > { %s1218_s12 = scalar_lea.vmem %s1524_s13, 8192  ;;  %s1352_s21 = smov [#allocation8]  }
  0x43   : > { %p1219_p7 = scmp.ne.s32.totalorder %s1524_s13, %s1218_s12  ;;  %s1223_s8 = sshll.u32 %s1352_s21, 4  ;;  %s1224_s8 = int_to_ptr.vmem [resolvable:$false] %s1223_s8 }
  0x44   : > { %s1225_s19 = scalar_lea.vmem %s1224_s8, 16384  ;;  %p1226_p3 = scmp.lt.s32.totalorder %s1524_s13, %s1224_s8 }
  0x45   : > { %p1221_p9 = pnand %p1219_p7, %p1175_p8  ;;  %p1227_p12 = scmp.lt.s32.totalorder %s1225_s19, %s1218_s12 }
  0x47   : > { %p1222_p2 = pneg %p1221_p9  ;;  %p1228_p10 = por %p1227_p12, %p1226_p3 }
  0x49   : > { %p1229_p0 = pnand %p1228_p10, %p1222_p2 }
  0x4b   : > { %1232 = shalt.err (!%p1229_p0)
}
  0x4c   : > { %s1817_s14 = smov 256   ;;  %s1233_s21 = scalar_lea.hbm %s1798_s0, 512 }
  0x4d   : > { %1106 = dma.hbm_to_vmem [thread:$0]  (!%p1455_p6), %s1515_s11, 8192, %s1524_s13, %s1459_s18, %s1817_s14, %s1817_s14, %s1350_s20  }
  0x4e   : > { %p1234_p8 = scmp.ne.s32.totalorder %s1798_s0, %s1233_s21  ;;  %p1235_p13 = pneg %p1520_p5 }
  0x4f   : > { %p1240_p11 = scmp.lt.u32.totalorder %s1233_s21, %s1798_s0 }
  0x50   : > { %p1236_p2 = pnand %p1235_p13, %p1234_p8 }
  0x52   : > { %p1237_p3 = pneg %p1236_p2 }
  0x54   : > { %p1242_p1 = pnand %p1240_p11, %p1237_p3 }
  0x56   : > { %1245 = shalt.err (!%p1242_p1)
}
  0x57   : > { %s1246_s18 = scalar_lea.vmem %s1507_s16, 512  ;;  %p1254_p9 = scmp.lt.s32.totalorder %s1507_s16, %s1507_s16 }
  0x58   : > { %p1247_p6 = scmp.ne.s32.totalorder %s1507_s16, %s1246_s18  ;;  %p1255_p12 = scmp.lt.s32.totalorder %s1246_s18, %s1246_s18 }
  0x5a   : > { %p1249_p4 = pnand %p1247_p6, %p1235_p13  ;;  %p1256_p10 = por %p1255_p12, %p1254_p9 }
  0x5c   : > { %p1250_p7 = pneg %p1249_p4 }
  0x5e   : > { %p1257_p0 = pnand %p1256_p10, %p1250_p7 }
  0x60   : > { %1260 = shalt.err (!%p1257_p0)
}
  0x61   : > { %1099 = dma.hbm_to_vmem [thread:$0]  (!%p1520_p5), %s1798_s0, 512, %s1507_s16, [#allocation4], %s1817_s14, %s1817_s14, %s1350_s20  }
  0x62   : > { %p1818_p8 = scmp.ne.s32.totalorder %s1815_s30, 0 }
  0x63   : > { %p1819_p13 = scmp.eq.s32.totalorder (!%p1818_p8), %s1490_s28, 0 }
  0x64   : > { %292 = sbr.rel (%p1818_p8) target bundleno = 724 (0x2d4), region = 44 }
  0x6b   : > { %1312 = dma.done.wait (%p1819_p13), [#allocation4], 512   ;;  %p1820_p2 = pmov %p1819_p13 }
  0x6c   : > { %s298_s13 = sand.u32 1, %s1490_s28   ;;  %s300_s15 = sand.u32 1, %s1329_s22  }
  0x6d   : > { %1314 = vsyncadd (%p1820_p2), [#allocation4], 4294966784  ;;  %s944_s19 = sshll.u32 %s300_s15, 9  ;;  %s299_s7 = scalar_lea.sflag [#allocation7], %s298_s13 }
  0x6e   : > { %s1585_s10 = scalar_lea.vmem [#allocation6], %s944_s19  ;;  %p1821_p3 = scmp.ne.s32.totalorder %s1814_s29, 0 }
  0x70   : > { %1316 = dma.done.wait (%p1821_p3), %s299_s7, 16384  }
  0x71   : > { %1318 = vsyncadd (%p1821_p3), %s299_s7, 4294950912  ;;  %s1591_s20 = scalar_lea.vmem [#allocation8], %s944_s19  ;;  %p946_p5 = scmp.ne.s32.totalorder %s1337_s24, 0 }
  0x72   : > { %v1353_v0 = vmov (!%p946_p5), 0.0  }
  0x73   : > { %350 = sbr.rel (%p946_p5) target bundleno = 122 (0x7a), region = 60  ;;  %351 = vst [vmem:[#allocation2] sm:$0xff] (!%p946_p5), %v1353_v0  ;;  %352 = vst [vmem:[#allocation2 + $0x8] sm:$0xff] (!%p946_p5), %v1353_v0 }
  0x74   : > { %353 = vst [vmem:[#allocation2 + $0x10] sm:$0xff] (!%p946_p5), %v1353_v0  ;;  %354 = vst [vmem:[#allocation2 + $0x18] sm:$0xff] (!%p946_p5), %v1353_v0 }
  0x7a PF: > { %v360_v1 = vld [vmem:[%s1585_s10 + $0x8] sm:$0xff]  ;;  %v362_v2 = vld [vmem:[%s1585_s10 + $0x18] sm:$0xff]  ;;  %v359_v3 = vld [vmem:[%s1585_s10] sm:$0xff]  ;;  %s947_s29 = sshll.u32 %s1337_s24, 1  ;;  %p948_p11 = scmp.ne.s32.totalorder %s1337_s24, 3 }
  0x7b   : > { %v956_v4 = vpack.c.bf16 %v362_v2, %v360_v1  ;;  %v361_v5 = vld [vmem:[%s1585_s10 + $0x10] sm:$0xff]  ;;  %v364_v6 = vld [vmem:[%s1585_s10 + $0x28] sm:$0xff]  ;;  %v366_v7 = vld [vmem:[%s1585_s10 + $0x38] sm:$0xff]  ;;  %s546_s14 = scalar_lea.vmem %s1800_s2, %s947_s29  ;;  %s548_s17 = scalar_lea.vmem %s1801_s3, %s947_s29 }
  0x7c   : > { %v958_v8 = vpack.c.bf16 %v361_v5, %v359_v3  ;;  %v960_v9 = vpack.c.bf16 %v366_v7, %v364_v6  ;;  %v363_v10 = vld [vmem:[%s1585_s10 + $0x20] sm:$0xff]  ;;  %v365_v11 = vld [vmem:[%s1585_s10 + $0x30] sm:$0xff]  ;;  %v368_v12 = vld [vmem:[%s1585_s10 + $0x48] sm:$0xff] }
  0x7d   : > { %957 = vmatprep.subr.bf16.mxu0 %v956_v4  ;;  %v370_v13 = vld [vmem:[%s1585_s10 + $0x58] sm:$0xff]  ;;  %v962_v14 = vpack.c.bf16 %v365_v11, %v363_v10  ;;  %v367_v16 = vld [vmem:[%s1585_s10 + $0x40] sm:$0xff]  ;;  %v369_v17 = vld [vmem:[%s1585_s10 + $0x50] sm:$0xff] }
  0x7e   : > { %959 = vmatpush1.bf16.msra.mxu0 %v958_v8  ;;  %v964_v15 = vpack.c.bf16 %v370_v13, %v368_v12  ;;  %v372_v18 = vld [vmem:[%s1585_s10 + $0x68] sm:$0xff]  ;;  %v374_v19 = vld [vmem:[%s1585_s10 + $0x78] sm:$0xff]  ;;  %v966_v20 = vpack.c.bf16 %v369_v17, %v367_v16  ;;  %v371_v22 = vld [vmem:[%s1585_s10 + $0x60] sm:$0xff] }
  0x7f   : > { %961 = vmatprep.subr.bf16.mxu0 %v960_v9  ;;  %v968_v21 = vpack.c.bf16 %v374_v19, %v372_v18  ;;  %v373_v23 = vld [vmem:[%s1585_s10 + $0x70] sm:$0xff]  ;;  %v376_v24 = vld [vmem:[%s1585_s10 + $0x88] sm:$0xff]  ;;  %v378_v25 = vld [vmem:[%s1585_s10 + $0x98] sm:$0xff] }
  0x80   : > { %v970_v26 = vpack.c.bf16 %v373_v23, %v371_v22  ;;  %v972_v27 = vpack.c.bf16 %v378_v25, %v376_v24  ;;  %v375_v28 = vld [vmem:[%s1585_s10 + $0x80] sm:$0xff]  ;;  %v377_v29 = vld [vmem:[%s1585_s10 + $0x90] sm:$0xff]  ;;  %v380_v30 = vld [vmem:[%s1585_s10 + $0xa8] sm:$0xff] }
  0x81   : > { %v382_v31 = vld [vmem:[%s1585_s10 + $0xb8] sm:$0xff]  ;;  %v974_v32 = vpack.c.bf16 %v377_v29, %v375_v28  ;;  %v379_v34 = vld [vmem:[%s1585_s10 + $0xa0] sm:$0xff]  ;;  %v381_v35 = vld [vmem:[%s1585_s10 + $0xb0] sm:$0xff] }
  0x82   : > { %963 = vmatpush1.bf16.msra.mxu0 %v962_v14  ;;  %v976_v33 = vpack.c.bf16 %v382_v31, %v380_v30  ;;  %v384_v36 = vld [vmem:[%s1585_s10 + $0xc8] sm:$0xff]  ;;  %v386_v37 = vld [vmem:[%s1585_s10 + $0xd8] sm:$0xff]  ;;  %v978_v38 = vpack.c.bf16 %v381_v35, %v379_v34  ;;  %v383_v40 = vld [vmem:[%s1585_s10 + $0xc0] sm:$0xff] }
  0x83   : > { %965 = vmatprep.subr.bf16.mxu0 %v964_v15  ;;  %v980_v39 = vpack.c.bf16 %v386_v37, %v384_v36  ;;  %v385_v41 = vld [vmem:[%s1585_s10 + $0xd0] sm:$0xff]  ;;  %v356_v42 = vld [vmem:[#allocation3 + $0x8] sm:$0xff]  ;;  %v390_v44 = vld [vmem:[%s1585_s10 + $0xf8] sm:$0xff] }
  0x84   : > { %v388_v43 = vld [vmem:[%s1585_s10 + $0xe8] sm:$0xff]  ;;  %487 = vmatprep.mubr.f32.mxu0 %v356_v42  ;;  %v982_v45 = vpack.c.bf16 %v385_v41, %v383_v40  ;;  %v387_v47 = vld [vmem:[%s1585_s10 + $0xe0] sm:$0xff]  ;;  %v389_v48 = vld [vmem:[%s1585_s10 + $0xf0] sm:$0xff] }
  0x85   : > { %v984_v46 = vpack.c.bf16 %v390_v44, %v388_v43  ;;  %v392_v49 = vld [vmem:[%s1585_s10 + $0x108] sm:$0xff]  ;;  %v394_v50 = vld [vmem:[%s1585_s10 + $0x118] sm:$0xff]  ;;  %v986_v51 = vpack.c.bf16 %v389_v48, %v387_v47  ;;  %v391_v53 = vld [vmem:[%s1585_s10 + $0x100] sm:$0xff] }
  0x86   : > { %967 = vmatpush1.bf16.msra.mxu0 %v966_v20  ;;  %v988_v52 = vpack.c.bf16 %v394_v50, %v392_v49  ;;  %v393_v54 = vld [vmem:[%s1585_s10 + $0x110] sm:$0xff]  ;;  %v396_v55 = vld [vmem:[%s1585_s10 + $0x128] sm:$0xff]  ;;  %v398_v56 = vld [vmem:[%s1585_s10 + $0x138] sm:$0xff] }
  0x87   : > { %969 = vmatprep.subr.bf16.mxu0 %v968_v21  ;;  %v990_v57 = vpack.c.bf16 %v393_v54, %v391_v53  ;;  %v992_v58 = vpack.c.bf16 %v398_v56, %v396_v55  ;;  %v395_v59 = vld [vmem:[%s1585_s10 + $0x120] sm:$0xff]  ;;  %v397_v60 = vld [vmem:[%s1585_s10 + $0x130] sm:$0xff]  ;;  %v400_v61 = vld [vmem:[%s1585_s10 + $0x148] sm:$0xff] }
  0x88   : > { %v402_v62 = vld [vmem:[%s1585_s10 + $0x158] sm:$0xff]  ;;  %v994_v63 = vpack.c.bf16 %v397_v60, %v395_v59  ;;  %v399_v1 = vld [vmem:[%s1585_s10 + $0x140] sm:$0xff]  ;;  %v401_v2 = vld [vmem:[%s1585_s10 + $0x150] sm:$0xff] }
  0x89   : > { %v996_v0 = vpack.c.bf16 %v402_v62, %v400_v61  ;;  %v404_v3 = vld [vmem:[%s1585_s10 + $0x168] sm:$0xff]  ;;  %v406_v4 = vld [vmem:[%s1585_s10 + $0x178] sm:$0xff]  ;;  %v998_v5 = vpack.c.bf16 %v401_v2, %v399_v1  ;;  %v403_v7 = vld [vmem:[%s1585_s10 + $0x160] sm:$0xff] }
  0x8a   : > { %971 = vmatpush1.bf16.msra.mxu0 %v970_v26  ;;  %v1000_v6 = vpack.c.bf16 %v406_v4, %v404_v3  ;;  %v405_v8 = vld [vmem:[%s1585_s10 + $0x170] sm:$0xff]  ;;  %v408_v9 = vld [vmem:[%s1585_s10 + $0x188] sm:$0xff]  ;;  %v410_v10 = vld [vmem:[%s1585_s10 + $0x198] sm:$0xff] }
  0x8b   : > { %973 = vmatprep.subr.bf16.mxu0 %v972_v27  ;;  %v1002_v11 = vpack.c.bf16 %v405_v8, %v403_v7  ;;  %v1004_v12 = vpack.c.bf16 %v410_v10, %v408_v9  ;;  %v407_v13 = vld [vmem:[%s1585_s10 + $0x180] sm:$0xff]  ;;  %v409_v14 = vld [vmem:[%s1585_s10 + $0x190] sm:$0xff]  ;;  %v412_v15 = vld [vmem:[%s1585_s10 + $0x1a8] sm:$0xff] }
  0x8c   : > { %v414_v16 = vld [vmem:[%s1585_s10 + $0x1b8] sm:$0xff]  ;;  %v1006_v17 = vpack.c.bf16 %v409_v14, %v407_v13  ;;  %v411_v19 = vld [vmem:[%s1585_s10 + $0x1a0] sm:$0xff]  ;;  %v413_v20 = vld [vmem:[%s1585_s10 + $0x1b0] sm:$0xff] }
  0x8d   : > { %v1008_v18 = vpack.c.bf16 %v414_v16, %v412_v15  ;;  %v416_v21 = vld [vmem:[%s1585_s10 + $0x1c8] sm:$0xff]  ;;  %v418_v22 = vld [vmem:[%s1585_s10 + $0x1d8] sm:$0xff]  ;;  %v1010_v23 = vpack.c.bf16 %v413_v20, %v411_v19  ;;  %v415_v25 = vld [vmem:[%s1585_s10 + $0x1c0] sm:$0xff] }
  0x8e   : > { %975 = vmatpush1.bf16.msra.mxu0 %v974_v32  ;;  %v1012_v24 = vpack.c.bf16 %v418_v22, %v416_v21  ;;  %v417_v26 = vld [vmem:[%s1585_s10 + $0x1d0] sm:$0xff]  ;;  %v420_v27 = vld [vmem:[%s1585_s10 + $0x1e8] sm:$0xff]  ;;  %v422_v28 = vld [vmem:[%s1585_s10 + $0x1f8] sm:$0xff] }
  0x8f   : > { %977 = vmatprep.subr.bf16.mxu0 %v976_v33  ;;  %v1014_v29 = vpack.c.bf16 %v417_v26, %v415_v25  ;;  %v1016_v30 = vpack.c.bf16 %v422_v28, %v420_v27  ;;  %v419_v31 = vld [vmem:[%s1585_s10 + $0x1e0] sm:$0xff]  ;;  %v421_v32 = vld [vmem:[%s1585_s10 + $0x1f0] sm:$0xff]  ;;  %v358_v35 = vld [vmem:[#allocation3 + $0x18] sm:$0xff] }
  0x90   : > { %v1018_v33 = vpack.c.bf16 %v421_v32, %v419_v31  ;;  %v355_v34 = vld [vmem:[#allocation3] sm:$0xff]  ;;  %v357_v36 = vld [vmem:[#allocation3 + $0x10] sm:$0xff]  ;;  %v633_v37 = vld [vmem:[%s1591_s20 + $0x8] sm:$0xff] }
  0x91   : > { %v632_v40 = vld [vmem:[%s1591_s20] sm:$0xff]  ;;  %v634_v41 = vld [vmem:[%s1591_s20 + $0x10] sm:$0xff]  ;;  %v637_v43 = vld [vmem:[%s1591_s20 + $0x28] sm:$0xff] }
  0x92   : > { %979 = vmatpush1.bf16.msra.mxu0 %v978_v38  ;;  %v635_v38 = vld [vmem:[%s1591_s20 + $0x18] sm:$0xff]  ;;  %v1022_v42 = vpack.c.bf16 %v634_v41, %v632_v40  ;;  %v638_v47 = vld [vmem:[%s1591_s20 + $0x30] sm:$0xff]  ;;  %v641_v49 = vld [vmem:[%s1591_s20 + $0x48] sm:$0xff] }
  0x93   : > { %981 = vmatprep.subr.bf16.mxu0 %v980_v39  ;;  %v1020_v39 = vpack.c.bf16 %v635_v38, %v633_v37  ;;  %v639_v44 = vld [vmem:[%s1591_s20 + $0x38] sm:$0xff]  ;;  %v642_v53 = vld [vmem:[%s1591_s20 + $0x50] sm:$0xff]  ;;  %v645_v55 = vld [vmem:[%s1591_s20 + $0x68] sm:$0xff] }
  0x94   : > { %v643_v50 = vld [vmem:[%s1591_s20 + $0x58] sm:$0xff]  ;;  %v646_v59 = vld [vmem:[%s1591_s20 + $0x70] sm:$0xff]  ;;  %v649_v61 = vld [vmem:[%s1591_s20 + $0x88] sm:$0xff] }
  0x95   : > { %1021 = vmatprep.subr.bf16.mxu1 %v1020_v39  ;;  %v647_v56 = vld [vmem:[%s1591_s20 + $0x78] sm:$0xff]  ;;  %v650_v1 = vld [vmem:[%s1591_s20 + $0x90] sm:$0xff]  ;;  %v653_v3 = vld [vmem:[%s1591_s20 + $0xa8] sm:$0xff] }
  0x96   : > { %983 = vmatpush1.bf16.msra.mxu0 %v982_v45  ;;  %1023 = vmatpush1.bf16.msra.mxu1 %v1022_v42  ;;  %v1024_v45 = vpack.c.bf16 %v639_v44, %v637_v43  ;;  %v651_v62 = vld [vmem:[%s1591_s20 + $0x98] sm:$0xff]  ;;  %v654_v7 = vld [vmem:[%s1591_s20 + $0xb0] sm:$0xff]  ;;  %v657_v9 = vld [vmem:[%s1591_s20 + $0xc8] sm:$0xff] }
  0x97   : > { %985 = vmatprep.subr.bf16.mxu0 %v984_v46  ;;  %v636_v46 = vld [vmem:[%s1591_s20 + $0x20] sm:$0xff]  ;;  %v655_v4 = vld [vmem:[%s1591_s20 + $0xb8] sm:$0xff]  ;;  %v658_v13 = vld [vmem:[%s1591_s20 + $0xd0] sm:$0xff] }
  0x98   : > { %v1026_v48 = vpack.c.bf16 %v638_v47, %v636_v46  ;;  %1025 = vmatprep.subr.bf16.mxu1 %v1024_v45  ;;  %v659_v10 = vld [vmem:[%s1591_s20 + $0xd8] sm:$0xff]  ;;  %v661_v15 = vld [vmem:[%s1591_s20 + $0xe8] sm:$0xff]  ;;  %v662_v19 = vld [vmem:[%s1591_s20 + $0xf0] sm:$0xff] }
  0x99   : > { %v663_v16 = vld [vmem:[%s1591_s20 + $0xf8] sm:$0xff]  ;;  %v665_v21 = vld [vmem:[%s1591_s20 + $0x108] sm:$0xff]  ;;  %v666_v25 = vld [vmem:[%s1591_s20 + $0x110] sm:$0xff] }
  0x9a   : > { %987 = vmatpush1.bf16.msra.mxu0 %v986_v51  ;;  %1027 = vmatpush1.bf16.msra.mxu1 %v1026_v48  ;;  %v1028_v51 = vpack.c.bf16 %v643_v50, %v641_v49  ;;  %v667_v22 = vld [vmem:[%s1591_s20 + $0x118] sm:$0xff]  ;;  %v669_v27 = vld [vmem:[%s1591_s20 + $0x128] sm:$0xff]  ;;  %v670_v31 = vld [vmem:[%s1591_s20 + $0x130] sm:$0xff] }
  0x9b   : > { %989 = vmatprep.subr.bf16.mxu0 %v988_v52  ;;  %v640_v52 = vld [vmem:[%s1591_s20 + $0x40] sm:$0xff]  ;;  %v671_v28 = vld [vmem:[%s1591_s20 + $0x138] sm:$0xff]  ;;  %v674_v37 = vld [vmem:[%s1591_s20 + $0x150] sm:$0xff] }
  0x9c   : > { %v1030_v54 = vpack.c.bf16 %v642_v53, %v640_v52  ;;  %1029 = vmatprep.subr.bf16.mxu1 %v1028_v51  ;;  %v677_v39 = vld [vmem:[%s1591_s20 + $0x168] sm:$0xff]  ;;  %v679_v40 = vld [vmem:[%s1591_s20 + $0x178] sm:$0xff]  ;;  %v676_v42 = vld [vmem:[%s1591_s20 + $0x160] sm:$0xff] }
  0x9d   : > { %v1064_v41 = vpack.c.bf16 %v679_v40, %v677_v39  ;;  %v678_v43 = vld [vmem:[%s1591_s20 + $0x170] sm:$0xff]  ;;  %v681_v45 = vld [vmem:[%s1591_s20 + $0x188] sm:$0xff]  ;;  %v683_v46 = vld [vmem:[%s1591_s20 + $0x198] sm:$0xff] }
  0x9e   : > { %991 = vmatpush1.bf16.msra.mxu0 %v990_v57  ;;  %1031 = vmatpush1.bf16.msra.mxu1 %v1030_v54  ;;  %v1032_v57 = vpack.c.bf16 %v647_v56, %v645_v55  ;;  %v1066_v44 = vpack.c.bf16 %v678_v43, %v676_v42  ;;  %v1068_v47 = vpack.c.bf16 %v683_v46, %v681_v45  ;;  %v680_v48 = vld [vmem:[%s1591_s20 + $0x180] sm:$0xff]  ;;  %v682_v49 = vld [vmem:[%s1591_s20 + $0x190] sm:$0xff]  ;;  %v685_v51 = vld [vmem:[%s1591_s20 + $0x1a8] sm:$0xff] }
  0x9f   : > { %993 = vmatprep.subr.bf16.mxu0 %v992_v58  ;;  %v644_v58 = vld [vmem:[%s1591_s20 + $0x60] sm:$0xff]  ;;  %v1070_v50 = vpack.c.bf16 %v682_v49, %v680_v48  ;;  %v687_v52 = vld [vmem:[%s1591_s20 + $0x1b8] sm:$0xff]  ;;  %v686_v55 = vld [vmem:[%s1591_s20 + $0x1b0] sm:$0xff] }
  0xa0   : > { %v1034_v60 = vpack.c.bf16 %v646_v59, %v644_v58  ;;  %1033 = vmatprep.subr.bf16.mxu1 %v1032_v57  ;;  %v684_v53 = vld [vmem:[%s1591_s20 + $0x1a0] sm:$0xff]  ;;  %v1072_v54 = vpack.c.bf16 %v687_v52, %v685_v51  ;;  %v689_v56 = vld [vmem:[%s1591_s20 + $0x1c8] sm:$0xff]  ;;  %v691_v57 = vld [vmem:[%s1591_s20 + $0x1d8] sm:$0xff] }
  0xa1   : > { %v1074_v58 = vpack.c.bf16 %v686_v55, %v684_v53  ;;  %v1076_v59 = vpack.c.bf16 %v691_v57, %v689_v56  ;;  %v1354_v53 = vmov 1966171168   ;;  %v560_v55 = vlaneseq }
  0xa2   : > { %995 = vmatpush1.bf16.msra.mxu0 %v994_v63  ;;  %1035 = vmatpush1.bf16.msra.mxu1 %v1034_v60  ;;  %v1036_v63 = vpack.c.bf16 %v651_v62, %v649_v61  ;;  %v688_v60 = vld [vmem:[%s1591_s20 + $0x1c0] sm:$0xff]  ;;  %v690_v61 = vld [vmem:[%s1591_s20 + $0x1d0] sm:$0xff]  ;;  %v693_v62 = vld [vmem:[%s1591_s20 + $0x1e8] sm:$0xff] }
  0xa3   : > { %997 = vmatprep.subr.bf16.mxu0 %v996_v0  ;;  %v648_v0 = vld [vmem:[%s1591_s20 + $0x80] sm:$0xff]  ;;  %v561_v57 = vshrl.u32 %v560_v55, 7 }
  0xa4   : > { %v1038_v2 = vpack.c.bf16 %v650_v1, %v648_v0  ;;  %1037 = vmatprep.subr.bf16.mxu1 %v1036_v63  ;;  %v695_v63 = vld [vmem:[%s1591_s20 + $0x1f8] sm:$0xff]  ;;  %v1078_v0 = vpack.c.bf16 %v690_v61, %v688_v60 }
  0xa5   : > { %v1080_v1 = vpack.c.bf16 %v695_v63, %v693_v62  ;;  %v547_v63 = vld [vmem:[%s546_s14] sm:$0x3] }
  0xa6   : > { %999 = vmatpush1.bf16.msra.mxu0 %v998_v5  ;;  %1039 = vmatpush1.bf16.msra.mxu1 %v1038_v2  ;;  %v1040_v5 = vpack.c.bf16 %v655_v4, %v653_v3  ;;  %v692_v2 = vld [vmem:[%s1591_s20 + $0x1e0] sm:$0xff]  ;;  %v694_v3 = vld [vmem:[%s1591_s20 + $0x1f0] sm:$0xff] }
  0xa7   : > { %1001 = vmatprep.subr.bf16.mxu0 %v1000_v6  ;;  %v652_v6 = vld [vmem:[%s1591_s20 + $0xa0] sm:$0xff]  ;;  %v1082_v4 = vpack.c.bf16 %v694_v3, %v692_v2  ;;  %v580_v2 = vsub.s32 1, %v561_v57 }
  0xa8   : > { %v1042_v8 = vpack.c.bf16 %v654_v7, %v652_v6  ;;  %1041 = vmatprep.subr.bf16.mxu1 %v1040_v5 }
  0xaa   : > { %1003 = vmatpush1.bf16.msra.mxu0 %v1002_v11  ;;  %1043 = vmatpush1.bf16.msra.mxu1 %v1042_v8  ;;  %v1044_v11 = vpack.c.bf16 %v659_v10, %v657_v9 }
  0xab   : > { %1005 = vmatprep.subr.bf16.mxu0 %v1004_v12  ;;  %v656_v12 = vld [vmem:[%s1591_s20 + $0xc0] sm:$0xff] }
  0xac   : > { %v1046_v14 = vpack.c.bf16 %v658_v13, %v656_v12  ;;  %1045 = vmatprep.subr.bf16.mxu1 %v1044_v11 }
  0xae   : > { %1007 = vmatpush1.bf16.msra.mxu0 %v1006_v17  ;;  %1047 = vmatpush1.bf16.msra.mxu1 %v1046_v14  ;;  %v1048_v17 = vpack.c.bf16 %v663_v16, %v661_v15 }
  0xaf   : > { %1009 = vmatprep.subr.bf16.mxu0 %v1008_v18  ;;  %v660_v18 = vld [vmem:[%s1591_s20 + $0xe0] sm:$0xff] }
  0xb0   : > { %v1050_v20 = vpack.c.bf16 %v662_v19, %v660_v18  ;;  %1049 = vmatprep.subr.bf16.mxu1 %v1048_v17 }
  0xb2   : > { %1011 = vmatpush1.bf16.msra.mxu0 %v1010_v23  ;;  %1051 = vmatpush1.bf16.msra.mxu1 %v1050_v20  ;;  %v1052_v23 = vpack.c.bf16 %v667_v22, %v665_v21 }
  0xb3   : > { %1013 = vmatprep.subr.bf16.mxu0 %v1012_v24  ;;  %v664_v24 = vld [vmem:[%s1591_s20 + $0x100] sm:$0xff] }
  0xb4   : > { %v1054_v26 = vpack.c.bf16 %v666_v25, %v664_v24  ;;  %1053 = vmatprep.subr.bf16.mxu1 %v1052_v23 }
  0xb6   : > { %1015 = vmatpush1.bf16.msra.mxu0 %v1014_v29  ;;  %1055 = vmatpush1.bf16.msra.mxu1 %v1054_v26  ;;  %v1056_v29 = vpack.c.bf16 %v671_v28, %v669_v27 }
  0xb7   : > { %1017 = vmatprep.subr.bf16.mxu0 %v1016_v30  ;;  %v668_v30 = vld [vmem:[%s1591_s20 + $0x120] sm:$0xff] }
  0xb8   : > { %v1058_v32 = vpack.c.bf16 %v670_v31, %v668_v30  ;;  %1057 = vmatprep.subr.bf16.mxu1 %v1056_v29 }
  0xba   : > { %1019 = vmatpush1.bf16.msra.mxu0 %v1018_v33  ;;  %1059 = vmatpush1.bf16.msra.mxu1 %v1058_v32  ;;  %v673_v33 = vld [vmem:[%s1591_s20 + $0x148] sm:$0xff] }
  0xbd   : > { %488 = vmatmul.mubr.f32.vlgmr.msra.gmra.mrb[0].mxu0 %v355_v34  ;;  %v675_v34 = vld [vmem:[%s1591_s20 + $0x158] sm:$0xff] }
  0xbe   : > { %493 = vmatprep.mubr.f32.mxu0 %v358_v35  ;;  %v1060_v35 = vpack.c.bf16 %v675_v34, %v673_v33 }
  0xc0   : > { %1061 = vmatprep.subr.bf16.mxu1 %v1060_v35 }
  0xc1   : > { %494 = vmatmul.mubr.f32.gmra.mrb[2].mxu0 %v357_v36  ;;  %v672_v36 = vld [vmem:[%s1591_s20 + $0x140] sm:$0xff] }
  0xc2   : > { %v1062_v38 = vpack.c.bf16 %v674_v37, %v672_v36 }
  0xc4   : > { %1063 = vmatpush1.bf16.msra.mxu1 %v1062_v38 }
  0xc5   : > { %1065 = vmatprep.subr.bf16.mxu1 %v1064_v41 }
  0xc8   : > { %1067 = vmatpush1.bf16.msra.mxu1 %v1066_v44 }
  0xc9   : > { %1069 = vmatprep.subr.bf16.mxu1 %v1068_v47 }
  0xcc   : > { %1071 = vmatpush1.bf16.msra.mxu1 %v1070_v50 }
  0xcd   : > { %1073 = vmatprep.subr.bf16.mxu1 %v1072_v54  ;;  %v558_v54 = vunpack.c.l.s4 %v1354_v53 }
  0xcf   : > { %v559_v56 = vunpack.c.0.s8 %v558_v54 }
  0xd0   : > { %1075 = vmatpush1.bf16.msra.mxu1 %v1074_v58 }
  0xd1   : > { %1077 = vmatprep.subr.bf16.mxu1 %v1076_v59  ;;  %v562_v59 = vsub.s32 %v559_v56, %v561_v57 }
  0xd4   : > { %1079 = vmatpush1.bf16.msra.mxu1 %v1078_v0 }
  0xd5   : > { %1081 = vmatprep.subr.bf16.mxu1 %v1080_v1  ;;  %v576_v1 = vsub.s32 0, %v561_v57 }
  0xd8   : > { %1083 = vmatpush1.bf16.msra.mxu1 %v1082_v4 }
 0x190   : > { %v1722_v5 = vpop.f32.mrb[0].mxu0 }
 0x191   : > { %v1724_v6 = vpop.f32.mrb[1].mxu0  ;;  %v517_v8 = vmul.f32 %v1722_v5, %v1722_v5 }
 0x192   : > { %v518_v12 = vmul.f32 %v1724_v6, %v1724_v6 }
 0x194   : > { %v1726_v7 = vpop.f32.mrb[2].mxu0 }
 0x195   : > { %v500_v9 = vadd.f32 %v1726_v7, %v1722_v5  ;;  %v519_v10 = vmul.f32 %v1726_v7, %v1726_v7  ;;  %v1734_v11 = vpop.f32.mrb[3].mxu0 }
 0x196   : > { %v507_v13 = vadd.f32 %v1734_v11, %v1724_v6  ;;  %v520_v14 = vmul.f32 %v1734_v11, %v1734_v11 }
 0x197   : > { %v501_v15 = vrot.slane %v500_v9, 4  ;;  %v521_v16 = vadd.f32 %v519_v10, %v517_v8 }
 0x198   : > { %v508_v17 = vrot.slane %v507_v13, 4  ;;  %v528_v18 = vadd.f32 %v520_v14, %v518_v12 }
 0x199   : > { %v502_v19 = vadd.f32 %v501_v15, %v500_v9  ;;  %v522_v20 = vrot.slane %v521_v16, 4 }
 0x19a   : > { %v509_v21 = vadd.f32 %v508_v17, %v507_v13  ;;  %v529_v22 = vrot.slane %v528_v18, 4 }
 0x19b   : > { %v503_v23 = vrot.slane %v502_v19, 2  ;;  %v523_v24 = vadd.f32 %v522_v20, %v521_v16 }
 0x19c   : > { %v510_v25 = vrot.slane %v509_v21, 2  ;;  %v530_v26 = vadd.f32 %v529_v22, %v528_v18  ;;  %v549_v18 = vld [vmem:[%s548_s17] sm:$0x3] }
 0x19d   : > { %v504_v27 = vadd.f32 %v503_v23, %v502_v19  ;;  %v524_v28 = vrot.slane %v523_v24, 2 }
 0x19e   : > { %v511_v29 = vadd.f32 %v510_v25, %v509_v21  ;;  %v531_v30 = vrot.slane %v530_v26, 2 }
 0x19f   : > { %v505_v31 = vrot.slane %v504_v27, 1  ;;  %v525_v32 = vadd.f32 %v524_v28, %v523_v24  ;;  %v629_v28 = vld [vmem:[#allocation2 + $0x8] sm:$0xff] }
 0x1a0   : > { %v512_v33 = vrot.slane %v511_v29, 1  ;;  %v532_v34 = vadd.f32 %v531_v30, %v530_v26 }
 0x1a1   : > { %v506_v35 = vadd.f32 %v505_v31, %v504_v27  ;;  %v526_v36 = vrot.slane %v525_v32, 1  ;;  %v628_v27 = vld [vmem:[#allocation2] sm:$0xff] }
 0x1a2   : > { %v513_v37 = vadd.f32 %v512_v33, %v511_v29  ;;  %v533_v38 = vrot.slane %v532_v34, 1  ;;  %v630_v33 = vld [vmem:[#allocation2 + $0x10] sm:$0xff] }
 0x1a3   : > { %v515_v39 = vmul.f32 0.0625, %v506_v35  ;;  %v527_v40 = vadd.f32 %v526_v36, %v525_v32 }
 0x1a4   : > { %v516_v41 = vmul.f32 0.0625, %v513_v37  ;;  %v534_v42 = vadd.f32 %v533_v38, %v532_v34  ;;  %v631_v34 = vld [vmem:[#allocation2 + $0x18] sm:$0xff] }
 0x1a5   : > { %v535_v43 = vmul.f32 0.0625, %v527_v40  ;;  %v537_v44 = vmul.f32 %v515_v39, %v515_v39 }
 0x1a6   : > { %v536_v45 = vmul.f32 0.0625, %v534_v42  ;;  %v538_v46 = vmul.f32 %v516_v41, %v516_v41 }
 0x1a7   : > { %v539_v47 = vsub.f32 %v535_v43, %v537_v44 }
 0x1a8   : > { %v540_v48 = vsub.f32 %v536_v45, %v538_v46 }
 0x1a9   : > { %v541_v49 = vmax.f32 %v539_v47, 0.0 }
 0x1aa   : > { %v542_v50 = vmax.f32 %v540_v48, 0.0 }
 0x1ab   : > { %v550_v51 = vadd.f32 1e-05, %v541_v49 }
 0x1ac   : > { %v551_v52 = vadd.f32 1e-05, %v542_v50 }
 0x1ad   : > { %1169 = vrsqrt.f32 %v550_v51 }
 0x1ae   : > { %1171 = vrsqrt.f32 %v551_v52 }
 0x1b7   : > { %v1170_v58 = vpop.eup %1169 }
 0x1b8   : > { %v1172_v60 = vpop.eup %1171 }
 0x1b9   : > { %v556_v61 = vcombine.low %v1170_v58, %v1172_v60 }
 0x1bb   : > { %v563_v62 = vrot.slane %v556_v61, %v562_v59 }
 0x1bd   : > { %v570_v0 = vrot.slane %v563_v62, %v562_v59 }
 0x1bf   : > { %v572_v3 = vmul.f32 %v570_v0, %v547_v63 }
 0x1c1   : > { %v577_v4 = vrot.slane %v572_v3, %v576_v1  ;;  %v581_v8 = vrot.slane %v572_v3, %v580_v2 }
 0x1c3   : > { %v585_v9 = vmul.f32 %v581_v8, %v516_v41  ;;  %v608_v10 = vmul.f32 %v581_v8, %v1734_v11  ;;  %v584_v12 = vmul.f32 %v577_v4, %v515_v39  ;;  %v606_v13 = vmul.f32 %v581_v8, %v1724_v6  ;;  %v787_v39 = vld [vmem:[%s1803_s5] sm:$0x3] (!%p948_p11) }
 0x1c4   : > { %v605_v14 = vmul.f32 %v577_v4, %v1722_v5  ;;  %v607_v15 = vmul.f32 %v577_v4, %v1726_v7  ;;  %v798_v42 = vrot.slane (!%p948_p11), %v787_v39, %v576_v1  ;;  %v802_v43 = vrot.slane (!%p948_p11), %v787_v39, %v580_v2 }
 0x1c5   : > { %v588_v16 = vcombine.low %v584_v12, %v585_v9 }
 0x1c7   : > { %v595_v17 = vrot.slane %v588_v16, %v562_v59 }
 0x1c9   : > { %v602_v19 = vrot.slane %v595_v17, %v562_v59 }
 0x1cb   : > { %v604_v20 = vsub.f32 %v549_v18, %v602_v19 }
 0x1cd   : > { %v617_v21 = vrot.slane %v604_v20, %v580_v2  ;;  %v613_v22 = vrot.slane %v604_v20, %v576_v1 }
 0x1cf   : > { %v621_v23 = vadd.f32 %v617_v21, %v606_v13  ;;  %v620_v11 = vadd.f32 %v613_v22, %v605_v14  ;;  %v623_v24 = vadd.f32 %v617_v21, %v608_v10  ;;  %v622_v25 = vadd.f32 %v613_v22, %v607_v15 }
 0x1d1   : > { %v625_v6 = vmax.f32 %v621_v23, 0.0  ;;  %v624_v26 = vmax.f32 %v620_v11, 0.0  ;;  %v627_v5 = vmax.f32 %v623_v24, 0.0  ;;  %v626_v7 = vmax.f32 %v622_v25, 0.0 }
 0x1d3   : > { %760 = vmatprep.mubr.f32.mxu1 %v625_v6 }
 0x1d4   : > { %761 = vmatmul.mubr.f32.vlgmr.msra.gmra.mrb[0].mxu1 %v624_v26 }
 0x1d5   : > { %766 = vmatprep.mubr.f32.mxu1 %v627_v5 }
 0x1d8   : > { %767 = vmatmul.mubr.f32.gmra.mrb[2].mxu1 %v626_v7 }
 0x2a7   : > { %v762_v29 = vpop.f32.mrb[0].mxu1 }
 0x2a8   : > { %v773_v30 = vadd.f32 %v762_v29, %v628_v27  ;;  %v764_v31 = vpop.f32.mrb[1].mxu1 }
 0x2a9   : > { %v774_v32 = vadd.f32 %v764_v31, %v629_v28  ;;  %784 = sbr.rel (%p948_p11) target bundleno = 698 (0x2ba), region = 64 }
 0x2aa   : > { %777 = vst [vmem:[#allocation2] sm:$0xff] %v773_v30 }
 0x2ab   : > { %778 = vst [vmem:[#allocation2 + $0x8] sm:$0xff] %v774_v32  ;;  %v768_v35 = vpop.f32.mrb[2].mxu1 }
 0x2ac   : > { %v775_v36 = vadd.f32 %v768_v35, %v630_v33  ;;  %v770_v37 = vpop.f32.mrb[3].mxu1 }
 0x2ad   : > { %v776_v38 = vadd.f32 %v770_v37, %v631_v34 }
 0x2ae   : > { %779 = vst [vmem:[#allocation2 + $0x10] sm:$0xff] %v775_v36 }
 0x2af   : > { %780 = vst [vmem:[#allocation2 + $0x18] sm:$0xff] %v776_v38 }
 0x2b1   : > { %v790_v40 = vld [vmem:[#allocation2] sm:$0xff] }
 0x2b2   : > { %v791_v41 = vld [vmem:[#allocation2 + $0x8] sm:$0xff]  ;;  %v805_v46 = vadd.f32 %v798_v42, %v790_v40 }
 0x2b3   : > { %v806_v47 = vadd.f32 %v802_v43, %v791_v41 }
 0x2b4   : > { %809 = vst [vmem:[#allocation9] sm:$0xff] %v805_v46 }
 0x2b5   : > { %v792_v44 = vld [vmem:[#allocation2 + $0x10] sm:$0xff]  ;;  %810 = vst [vmem:[#allocation9 + $0x8] sm:$0xff] %v806_v47 }
 0x2b6   : > { %v793_v45 = vld [vmem:[#allocation2 + $0x18] sm:$0xff]  ;;  %v807_v48 = vadd.f32 %v798_v42, %v792_v44 }
 0x2b7   : > { %v808_v49 = vadd.f32 %v802_v43, %v793_v45 }
 0x2b8   : > { %811 = vst [vmem:[#allocation9 + $0x10] sm:$0xff] %v807_v48 }
 0x2b9   : > { %812 = vst [vmem:[#allocation9 + $0x18] sm:$0xff] %v808_v49 }
 0x2ba PF: > { %p1110_p1 = scmp.eq.s32.totalorder %s1490_s28, 3  ;;  %s1355_s24 = smov [#allocation9]  }
 0x2bb   : > { %s823_s1 = sshll.u32 %s1355_s24, 4  ;;  %s824_s1 = int_to_ptr.vmem [resolvable:$true] %s823_s1 }
 0x2bc   : > { %s1261_s11 = scalar_lea.vmem %s824_s1, 512  ;;  %p1268_p9 = scmp.lt.s32.totalorder %s824_s1, %s824_s1 }
 0x2bd   : > { %p1262_p6 = scmp.ne.s32.totalorder %s824_s1, %s1261_s11  ;;  %p1269_p12 = scmp.lt.s32.totalorder %s1261_s11, %s1261_s11 }
 0x2bf   : > { %p1263_p4 = pnand %p1262_p6, %p1110_p1  ;;  %p1270_p10 = por %p1269_p12, %p1268_p9 }
 0x2c1   : > { %p1264_p7 = pneg %p1263_p4 }
 0x2c3   : > { %p1271_p0 = pnand %p1270_p10, %p1264_p7 }
 0x2c5   : > { %1274 = shalt.err (!%p1271_p0)
}
 0x2c6   : > { %s1275_s19 = scalar_lea.hbm %s1804_s6, 512 }
 0x2c7   : > { %p1276_p8 = scmp.ne.s32.totalorder %s1804_s6, %s1275_s19  ;;  %p1281_p3 = scmp.lt.u32.totalorder %s1275_s19, %s1804_s6 }
 0x2c9   : > { %p1277_p13 = pnand %p1276_p8, %p1110_p1 }
 0x2cb   : > { %p1278_p2 = pneg %p1277_p13 }
 0x2cd   : > { %p1283_p5 = pnand %p1281_p3, %p1278_p2 }
 0x2cf   : > { %1286 = shalt.err (!%p1283_p5)
}
 0x2d0   : > { %s1356_s30 = smov 256   ;;  %s1357_s16 = smov 16  }
 0x2d1   : > { %1093 = dma.vmem_to_hbm [thread:$0]  (%p1110_p1), %s824_s1, 512, %s1804_s6, [#allocation5], %s1356_s30, %s1356_s30, %s1357_s16  }
 0x2d2   : > { %1320 = dma.done.wait (%p1110_p1), [#allocation5], 512  }
 0x2d3   : > { %1322 = vsyncadd (%p1110_p1), [#allocation5], 4294966784 }
 0x2d4 PF: > { %s21_s26 = sadd.s32 1, %s1345_s26   ;;  %s1822_s21 = smov %s1329_s22 }
 0x2d5   : > { %p18_p11 = scmp.ge.s32.totalorder %s21_s26, 6   ;;  %s1823_s22 = smov %s1333_s23 }
 0x2d6   : > { %s1824_s23 = smov %s1440_s9  ;;  %s1825_s24 = smov %s1341_s25 }
 0x2d7   : > { %s1826_s25 = smov %s1828_s27  ;;  %20 = sbr.rel (!%p18_p11) target bundleno = 8 (0x8), region = 108 }
 0x2de   :  { %839 = vsyncpa [#allocation4], 1 }
 0x2df   :  { %841 = vsyncpa [#allocation4 + $0x1], 1 }
 0x2e0   :  { %842 = vsyncpa [#allocation7], 1 }
 0x2e1   :  { %844 = vsyncpa [#allocation7 + $0x1], 1 }
 0x2e2   :  { %845 = vsyncpa [#allocation5], 1 }
 0x2e3   :  { %847 = vsyncpa [#allocation5 + $0x1], 1 }

</bundles_post_ra>
